<compile_context>
chip_gen: v6e
topology: v6e:2x2x1
jax: 0.10.0
libtpu: 0.0.40
codegen_flags: <defaults>
</compile_context>

<pallas_src>
import math

import jax
import jax.numpy as jnp
from jax.experimental import pallas as pl
from jax.experimental.pallas import tpu as pltpu

NEG_SLOPE = 0.01  # nn.LeakyReLU default
LANE = 128


def _round_up(x, m):
    return (x + m - 1) // m * m


def _mlp_kernel(tweet_ref, des_ref, wf1_ref, wf2_ref, bf_ref, wc_ref, bc_ref, out_ref):
    dt = wf1_ref.dtype
    # Folded first stage: h = LeakyReLU(tweet @ Wf1 + des @ Wf2 + bf)
    # Inputs arrive in their original (f32) layout; cast in VMEM just before the MXU.
    h = (jnp.dot(tweet_ref[...].astype(dt), wf1_ref[...], preferred_element_type=jnp.float32)
         + jnp.dot(des_ref[...].astype(dt), wf2_ref[...], preferred_element_type=jnp.float32)
         + bf_ref[...])
    # LeakyReLU(0.01): max(h, 0.01*h) is exact for slope < 1.
    h = jnp.maximum(h, NEG_SLOPE * h)

    # TODO(synk): Dropout(p=0.5) is identity in eval mode; training-mode masking not implemented.

    # Classifier (lane-dense padded output, stored in compute dtype; wrapper slices to 2 logits).
    out_ref[...] = (jnp.dot(h.astype(wc_ref.dtype), wc_ref[...],
                            preferred_element_type=jnp.float32)
                    + bc_ref[...]).astype(out_ref.dtype)


def prepare_params(params, *, compute_dtype=jnp.bfloat16):
    """One-time parameter prep: exact fold of pre_model1/2 into the concat-Linear,
    pre-transposition, lane padding, and dtype cast.  Run once, reuse per call."""
    w1 = params["w1"].astype(jnp.float32)   # [half, D]
    w2 = params["w2"].astype(jnp.float32)   # [half, D]
    wt = params["wt"].astype(jnp.float32)   # [H, D]
    wc = params["wc"].astype(jnp.float32)   # [C, H]
    b1 = params["b1"].astype(jnp.float32)
    b2 = params["b2"].astype(jnp.float32)
    bt = params["bt"].astype(jnp.float32)
    bc = params["bc"].astype(jnp.float32)

    half, D = w1.shape
    H = wt.shape[0]
    C = wc.shape[0]

    wta = wt[:, :half]                      # [H, half]  (acts on pre1)
    wtb = wt[:, half:]                      # [H, half]  (acts on pre2)

    # Exact fold (no nonlinearity between the pre-Linears and the concat-Linear):
    #   concat(x@w1.T+b1, y@w2.T+b2) @ wt.T + bt
    #     = x @ (w1.T @ wta.T) + y @ (w2.T @ wtb.T) + (b1 @ wta.T + b2 @ wtb.T + bt)
    wf1 = w1.T @ wta.T                      # [D, H]
    wf2 = w2.T @ wtb.T                      # [D, H]
    bf = b1 @ wta.T + b2 @ wtb.T + bt       # [H]

    # NOTE: folded weights are sums of D/2 products computed in f32 then cast to
    # compute_dtype; re-validate bf16 tolerance at production D/H.
    Hp = _round_up(H, LANE)                 # lane-dense hidden dim
    Cp = _round_up(C, LANE)                 # lane-dense output dim

    wf1_p = jnp.zeros((D, Hp), jnp.float32).at[:, :H].set(wf1)
    wf2_p = jnp.zeros((D, Hp), jnp.float32).at[:, :H].set(wf2)
    bf_p = jnp.zeros((1, Hp), jnp.float32).at[:, :H].set(bf)
    wc_p = jnp.zeros((Hp, Cp), jnp.float32).at[:H, :C].set(wc.T)
    bc_p = jnp.zeros((1, Cp), jnp.float32).at[:, :C].set(bc)

    return dict(
        wf1=wf1_p.astype(compute_dtype),
        wf2=wf2_p.astype(compute_dtype),
        bf=bf_p,                             # f32 bias, added to f32 accumulator
        wc=wc_p.astype(compute_dtype),
        bc=bc_p,                             # f32 bias
        D=D, H_pad=Hp, C=C, C_pad=Cp,
        compute_dtype=compute_dtype,
    )


def _default_bm(B):
    """Batch-tile heuristic: fat tiles for grid-overhead amortization, but always
    >= 2 grid steps for B > 64 so the parallel batch axis can shard across the two
    TensorCores on v7x (free on v5e/v6e)."""
    if B <= 64:
        return _round_up(B, 16)
    return min(512, _round_up(pl.cdiv(B, 2), 16))


def mlp_classifier_forward(tweet, des, prepared, *, bm=None):
    """Pallas forward pass. tweet/des: [B, D]. Returns [B, 2] float32 logits."""
    B, D = tweet.shape
    assert des.shape == (B, D)
    assert D == prepared["D"]
    dt = prepared["compute_dtype"]
    Hp, C, Cp = prepared["H_pad"], prepared["C"], prepared["C_pad"]

    if bm is None:
        bm = _default_bm(B)

    # cdiv grid with a partial last tile: OOB input rows are unspecified but only
    # feed output rows that are never written back / are sliced off below.  Every
    # output row depends solely on its own input row (no cross-batch reduction).
    grid = (pl.cdiv(B, bm),)
    batch_spec = lambda shape: pl.BlockSpec(shape, lambda i: (i, 0))
    const_spec = lambda shape: pl.BlockSpec(shape, lambda i: (0, 0))

    out = pl.pallas_call(
        _mlp_kernel,
        out_shape=jax.ShapeDtypeStruct((B, Cp), dt),   # lane-dense, compute-dtype writeback
        grid_spec=pltpu.PrefetchScalarGridSpec(
            num_scalar_prefetch=0,
            grid=grid,
            in_specs=[
                batch_spec((bm, D)),         # tweet tile (original dtype, cast in kernel)
                batch_spec((bm, D)),         # des tile
                const_spec((D, Hp)),         # Wf1 (folded)
                const_spec((D, Hp)),         # Wf2 (folded)
                const_spec((1, Hp)),         # bf  (folded bias, f32)
                const_spec((Hp, Cp)),        # classifier weight (lane-padded)
                const_spec((1, Cp)),         # classifier bias   (lane-padded, f32)
            ],
            out_specs=batch_spec((bm, Cp)),  # lane-dense output block
        ),
        compiler_params=pltpu.CompilerParams(
            # single batch axis, independent across tiles -> megacore-shardable
            dimension_semantics=("parallel",),
            vmem_limit_bytes=32 * 1024 * 1024,
        ),
    )(tweet, des, prepared["wf1"], prepared["wf2"], prepared["bf"],
      prepared["wc"], prepared["bc"])

    return out[:, :C].astype(jnp.float32)


def _init_linear(key, out_dim, in_dim):
    """Deterministic init mimicking nn.Linear default (uniform +/- 1/sqrt(fan_in))."""
    kw, kb = jax.random.split(key)
    bound = 1.0 / math.sqrt(in_dim)
    w = jax.random.uniform(kw, (out_dim, in_dim), jnp.float32, -bound, bound)
    b = jax.random.uniform(kb, (out_dim,), jnp.float32, -bound, bound)
    return w, b


def _reference_forward(tweet, des, params):
    pre1 = tweet @ params["w1"].T + params["b1"]
    pre2 = des @ params["w2"].T + params["b2"]
    x = jnp.concatenate([pre1, pre2], axis=1)
    h = x @ params["wt"].T + params["bt"]
    h = jnp.where(h > 0, h, NEG_SLOPE * h)
    return h @ params["wc"].T + params["bc"]


if __name__ == "__main__":
    # Small shapes consistent with the module (input_dim, hidden_dim scaled down).
    B, INPUT_DIM, HIDDEN_DIM = 16, 64, 32

    key = jax.random.PRNGKey(0)
    k_in1, k_in2, k_in3, k_in4, k1, k2, k3, k4 = jax.random.split(key, 8)

    tweet = jax.random.normal(k_in1, (B, INPUT_DIM), jnp.float32)
    des = jax.random.normal(k_in2, (B, INPUT_DIM), jnp.float32)

    w1, b1 = _init_linear(k1, INPUT_DIM // 2, INPUT_DIM)   # pre_model1
    w2, b2 = _init_linear(k2, INPUT_DIM // 2, INPUT_DIM)   # pre_model2
    wt, bt = _init_linear(k3, HIDDEN_DIM, INPUT_DIM)       # linear_relu_tweet
    wc, bc = _init_linear(k4, 2, HIDDEN_DIM)               # classifier
    params = dict(w1=w1, b1=b1, w2=w2, b2=b2, wt=wt, bt=bt, wc=wc, bc=bc)

    ref = _reference_forward(tweet, des, params)

    # 1) f32 compute path: validates the algebraic fold / padding exactly.
    prep_f32 = prepare_params(params, compute_dtype=jnp.float32)
    out_f32 = jax.block_until_ready(mlp_classifier_forward(tweet, des, prep_f32))
    assert out_f32.shape == (B, 2)
    assert jnp.allclose(out_f32, ref, atol=1e-4, rtol=1e-4), "f32 mismatch vs reference"

    # 2) bf16 compute path (production config): looser tolerance for bf16 rounding
    #    of folded weights and of the bf16 output store.
    prep_bf16 = prepare_params(params, compute_dtype=jnp.bfloat16)
    out_bf16 = jax.block_until_ready(mlp_classifier_forward(tweet, des, prep_bf16))
    assert out_bf16.shape == (B, 2)
    assert jnp.allclose(out_bf16, ref, atol=5e-2, rtol=5e-2), "bf16 mismatch vs reference"

    # 3) Multi-tile path with a partial last tile (exercises cdiv grid + >=2 grid
    #    steps, i.e. the v7x two-TensorCore split), f32 compute for a tight check.
    B2 = 200
    tweet2 = jax.random.normal(k_in3, (B2, INPUT_DIM), jnp.float32)
    des2 = jax.random.normal(k_in4, (B2, INPUT_DIM), jnp.float32)
    ref2 = _reference_forward(tweet2, des2, params)
    out2 = jax.block_until_ready(mlp_classifier_forward(tweet2, des2, prep_f32))
    assert out2.shape == (B2, 2)
    assert jnp.allclose(out2, ref2, atol=1e-4, rtol=1e-4), "multi-tile mismatch vs reference"

    print("KERNEL_OK")
</pallas_src>

<mosaic_0001>
module attributes {stable_mosaic.version = 11 : i64} {
  func.func @_mlp_kernel(%arg0: i32, %arg1: memref<16x64xf32, #tpu.memory_space<vmem>>, %arg2: memref<16x64xf32, #tpu.memory_space<vmem>>, %arg3: memref<64x128xf32, #tpu.memory_space<vmem>>, %arg4: memref<64x128xf32, #tpu.memory_space<vmem>>, %arg5: memref<1x128xf32, #tpu.memory_space<vmem>>, %arg6: memref<128x128xf32, #tpu.memory_space<vmem>>, %arg7: memref<1x128xf32, #tpu.memory_space<vmem>>, %arg8: memref<16x128xf32, #tpu.memory_space<vmem>>) attributes {dimension_semantics = [#tpu.dimension_semantics<parallel>], iteration_bounds = array<i64: 1>, scalar_prefetch = 0 : i64, scratch_operands = 0 : i64, tpu.core_type = #tpu.core_type<tc>, window_params = [{transform_indices = @transform_0, window_bounds = array<i64: 16, 64>}, {transform_indices = @transform_1, window_bounds = array<i64: 16, 64>}, {pipeline_mode = #tpu.pipeline_mode<synchronous>, transform_indices = @transform_2, window_bounds = array<i64: 64, 128>}, {pipeline_mode = #tpu.pipeline_mode<synchronous>, transform_indices = @transform_3, window_bounds = array<i64: 64, 128>}, {pipeline_mode = #tpu.pipeline_mode<synchronous>, transform_indices = @transform_4, window_bounds = array<i64: 1, 128>}, {pipeline_mode = #tpu.pipeline_mode<synchronous>, transform_indices = @transform_5, window_bounds = array<i64: 128, 128>}, {pipeline_mode = #tpu.pipeline_mode<synchronous>, transform_indices = @transform_6, window_bounds = array<i64: 1, 128>}, {transform_indices = @transform_7, window_bounds = array<i64: 16, 128>}]} {
    %c0 = arith.constant 0 : index
    %c0_0 = arith.constant 0 : index
    %0 = vector.load %arg1[%c0, %c0_0] : memref<16x64xf32, #tpu.memory_space<vmem>>, vector<16x64xf32>
    %c0_1 = arith.constant 0 : index
    %c0_2 = arith.constant 0 : index
    %1 = vector.load %arg3[%c0_1, %c0_2] : memref<64x128xf32, #tpu.memory_space<vmem>>, vector<64x128xf32>
    %cst = arith.constant dense<0.000000e+00> : vector<16x128xf32>
    %2 = tpu.matmul %0, %1, %cst {dimension_numbers = #tpu.dot_dimension_numbers<[1], [0], [0], [1], [0, 0, 1, 1], [], []>} : vector<16x64xf32>, vector<64x128xf32>, vector<16x128xf32> -> vector<16x128xf32>
    %c0_3 = arith.constant 0 : index
    %c0_4 = arith.constant 0 : index
    %3 = vector.load %arg2[%c0_3, %c0_4] : memref<16x64xf32, #tpu.memory_space<vmem>>, vector<16x64xf32>
    %c0_5 = arith.constant 0 : index
    %c0_6 = arith.constant 0 : index
    %4 = vector.load %arg4[%c0_5, %c0_6] : memref<64x128xf32, #tpu.memory_space<vmem>>, vector<64x128xf32>
    %cst_7 = arith.constant dense<0.000000e+00> : vector<16x128xf32>
    %5 = tpu.matmul %3, %4, %cst_7 {dimension_numbers = #tpu.dot_dimension_numbers<[1], [0], [0], [1], [0, 0, 1, 1], [], []>} : vector<16x64xf32>, vector<64x128xf32>, vector<16x128xf32> -> vector<16x128xf32>
    %6 = arith.addf %2, %5 : vector<16x128xf32>
    %c0_8 = arith.constant 0 : index
    %c0_9 = arith.constant 0 : index
    %7 = vector.load %arg5[%c0_8, %c0_9] : memref<1x128xf32, #tpu.memory_space<vmem>>, vector<1x128xf32>
    %8 = vector.broadcast %7 : vector<1x128xf32> to vector<16x128xf32>
    %9 = arith.addf %6, %8 : vector<16x128xf32>
    %cst_10 = arith.constant 0.00999999977 : f32
    %10 = vector.broadcast %cst_10 : f32 to vector<16x128xf32>
    %11 = arith.mulf %10, %9 : vector<16x128xf32>
    %12 = arith.maximumf %9, %11 : vector<16x128xf32>
    %c0_11 = arith.constant 0 : index
    %c0_12 = arith.constant 0 : index
    %13 = vector.load %arg6[%c0_11, %c0_12] : memref<128x128xf32, #tpu.memory_space<vmem>>, vector<128x128xf32>
    %cst_13 = arith.constant dense<0.000000e+00> : vector<16x128xf32>
    %14 = tpu.matmul %12, %13, %cst_13 {dimension_numbers = #tpu.dot_dimension_numbers<[1], [0], [0], [1], [0, 0, 1, 1], [], []>} : vector<16x128xf32>, vector<128x128xf32>, vector<16x128xf32> -> vector<16x128xf32>
    %c0_14 = arith.constant 0 : index
    %c0_15 = arith.constant 0 : index
    %15 = vector.load %arg7[%c0_14, %c0_15] : memref<1x128xf32, #tpu.memory_space<vmem>>, vector<1x128xf32>
    %16 = vector.broadcast %15 : vector<1x128xf32> to vector<16x128xf32>
    %17 = arith.addf %14, %16 : vector<16x128xf32>
    %c0_16 = arith.constant 0 : index
    %c0_17 = arith.constant 0 : index
    %18 = vector.load %arg8[%c0_16, %c0_17] : memref<16x128xf32, #tpu.memory_space<vmem>>, vector<16x128xf32>
    tpu.vector_store %arg8[%c0_16, %c0_17], %17 {strides = array<i32>} : memref<16x128xf32, #tpu.memory_space<vmem>>, vector<16x128xf32>,
    return
  }
  func.func @transform_0(%arg0: i32) -> (i32, i32) {
    %c0_i32 = arith.constant 0 : i32
    %c0_i32_0 = arith.constant 0 : i32
    return %arg0, %c0_i32 : i32, i32
  }
  func.func @transform_1(%arg0: i32) -> (i32, i32) {
    %c0_i32 = arith.constant 0 : i32
    %c0_i32_0 = arith.constant 0 : i32
    return %arg0, %c0_i32 : i32, i32
  }
  func.func @transform_2(%arg0: i32) -> (i32, i32) {
    %c0_i32 = arith.constant 0 : i32
    %c0_i32_0 = arith.constant 0 : i32
    %c0_i32_1 = arith.constant 0 : i32
    return %c0_i32, %c0_i32_0 : i32, i32
  }
  func.func @transform_3(%arg0: i32) -> (i32, i32) {
    %c0_i32 = arith.constant 0 : i32
    %c0_i32_0 = arith.constant 0 : i32
    %c0_i32_1 = arith.constant 0 : i32
    return %c0_i32, %c0_i32_0 : i32, i32
  }
  func.func @transform_4(%arg0: i32) -> (i32, i32) {
    %c0_i32 = arith.constant 0 : i32
    %c0_i32_0 = arith.constant 0 : i32
    %c0_i32_1 = arith.constant 0 : i32
    return %c0_i32, %c0_i32_0 : i32, i32
  }
  func.func @transform_5(%arg0: i32) -> (i32, i32) {
    %c0_i32 = arith.constant 0 : i32
    %c0_i32_0 = arith.constant 0 : i32
    %c0_i32_1 = arith.constant 0 : i32
    return %c0_i32, %c0_i32_0 : i32, i32
  }
  func.func @transform_6(%arg0: i32) -> (i32, i32) {
    %c0_i32 = arith.constant 0 : i32
    %c0_i32_0 = arith.constant 0 : i32
    %c0_i32_1 = arith.constant 0 : i32
    return %c0_i32, %c0_i32_0 : i32, i32
  }
  func.func @transform_7(%arg0: i32) -> (i32, i32) {
    %c0_i32 = arith.constant 0 : i32
    %c0_i32_0 = arith.constant 0 : i32
    return %arg0, %c0_i32 : i32, i32
  }
}

</mosaic_0001>

<bundles_post_ra>
// kernel: tpu_custom_call.1
= control target key start
LH: loop header
LB: loop body
LE: loop exit
PB: predicated region body
PF: predicated region fallthrough
CT: control target
= control target key end

     0   :  { %12 = vsyncpa [#allocation3], 0  ;;  %s757_s0 = inlined_call_operand.hbm [shape: f32[16,64], index: 0, kind: input, shape index: {}]   ;;  %s758_s1 = inlined_call_operand.hbm [shape: f32[16,64], index: 1, kind: input, shape index: {}]   ;;  %s759_s2 = inlined_call_operand.hbm [shape: f32[64,128], index: 2, kind: input, shape index: {}]   ;;  %s760_s3 = inlined_call_operand.hbm [shape: f32[64,128], index: 3, kind: input, shape index: {}]   ;;  %s761_s4 = inlined_call_operand.vmem [shape: f32[1,128], index: 4, kind: input, shape index: {}]   ;;  %s762_s5 = inlined_call_operand.hbm [shape: f32[128,128], index: 5, kind: input, shape index: {}]   ;;  %s763_s6 = inlined_call_operand.vmem [shape: f32[1,128], index: 6, kind: input, shape index: {}]   ;;  %s764_s7 = inlined_call_operand.hbm [shape: f32[16,128], index: 7, kind: output, shape index: {}]  }
   0x1   :  { %13 = vsyncpa [#allocation6], 0 }
   0x2   :  { %14 = vsyncpa [#allocation9], 0 }
   0x3   :  { %15 = vsyncpa [#allocation4], 0  ;;  %s663_s24 = smov [#allocation5]   ;;  %s664_s26 = smov [#allocation8]  }
   0x4   :  { %s33_s25 = sshll.u32 %s663_s24, 4  ;;  %s57_s27 = sshll.u32 %s664_s26, 4  ;;  %s34_s25 = int_to_ptr.vmem [resolvable:$true] %s33_s25  ;;  %s58_s27 = int_to_ptr.vmem [resolvable:$true] %s57_s27 }
   0x5   :  { %s543_s28 = scalar_lea.vmem %s34_s25, 256  ;;  %p548_p1 = scmp.lt.s32.totalorder %s34_s25, %s34_s25 }
   0x6   :  { %p544_p0 = scmp.ne.s32.totalorder %s34_s25, %s543_s28  ;;  %p549_p2 = scmp.lt.s32.totalorder %s543_s28, %s543_s28 }
   0x8   :  { %p550_p3 = por %p549_p2, %p548_p1 }
   0xa   :  { %p551_p4 = pnand %p550_p3, %p544_p0 }
   0xc   :  { %554 = shalt.err (!%p551_p4)
}
   0xd   :  { %s665_s29 = smov 128   ;;  %s666_s30 = smov 8  }
   0xe   :  { %39 = dma.hbm_to_vmem [thread:$0]  %s758_s1, 256, %s34_s25, [#allocation6], %s665_s29, %s665_s29, %s666_s30  }
   0xf   :  { %s563_s10 = scalar_lea.vmem %s58_s27, 1024  ;;  %p568_p6 = scmp.lt.s32.totalorder %s58_s27, %s58_s27 }
  0x10   :  { %p564_p5 = scmp.ne.s32.totalorder %s58_s27, %s563_s10  ;;  %p569_p7 = scmp.lt.s32.totalorder %s563_s10, %s563_s10 }
  0x12   :  { %p570_p8 = por %p569_p7, %p568_p6 }
  0x14   :  { %p571_p9 = pnand %p570_p8, %p564_p5 }
  0x16   :  { %574 = shalt.err (!%p571_p9)
}
  0x17   :  { %63 = dma.hbm_to_vmem [thread:$0]  %s760_s3, 1024, %s58_s27, [#allocation9], %s665_s29, %s665_s29, %s666_s30  }
  0x18   :  { %s667_s13 = smov [#allocation2]   ;;  %s668_s15 = smov [#allocation7]  }
  0x19   :  { %s21_s14 = sshll.u32 %s667_s13, 4  ;;  %s45_s16 = sshll.u32 %s668_s15, 4  ;;  %s22_s14 = int_to_ptr.vmem [resolvable:$true] %s21_s14  ;;  %s46_s16 = int_to_ptr.vmem [resolvable:$true] %s45_s16 }
  0x1a   :  { %s583_s1 = scalar_lea.vmem %s22_s14, 256  ;;  %p588_p11 = scmp.lt.s32.totalorder %s22_s14, %s22_s14 }
  0x1b   :  { %p584_p10 = scmp.ne.s32.totalorder %s22_s14, %s583_s1  ;;  %p589_p12 = scmp.lt.s32.totalorder %s583_s1, %s583_s1 }
  0x1d   :  { %p590_p13 = por %p589_p12, %p588_p11 }
  0x1f   :  { %p591_p0 = pnand %p590_p13, %p584_p10 }
  0x21   :  { %594 = shalt.err (!%p591_p0)
}
  0x22   :  { %27 = dma.hbm_to_vmem [thread:$0]  %s757_s0, 256, %s22_s14, [#allocation3], %s665_s29, %s665_s29, %s666_s30  }
  0x23   :  { %s603_s3 = scalar_lea.vmem %s46_s16, 1024  ;;  %p608_p2 = scmp.lt.s32.totalorder %s46_s16, %s46_s16 }
  0x24   :  { %p604_p1 = scmp.ne.s32.totalorder %s46_s16, %s603_s3  ;;  %p609_p3 = scmp.lt.s32.totalorder %s603_s3, %s603_s3 }
  0x26   :  { %p610_p4 = por %p609_p3, %p608_p2 }
  0x28   :  { %p611_p5 = pnand %p610_p4, %p604_p1 }
  0x2a   :  { %614 = shalt.err (!%p611_p5)
}
  0x2b   :  { %51 = dma.hbm_to_vmem [thread:$0]  %s759_s2, 1024, %s46_s16, [#allocation6], %s665_s29, %s665_s29, %s666_s30  }
  0x2c   :  { %s669_s21 = smov [#allocation10]  }
  0x2d   :  { %s71_s22 = sshll.u32 %s669_s21, 4  ;;  %s72_s22 = int_to_ptr.vmem [resolvable:$true] %s71_s22 }
  0x2e   :  { %s623_s23 = scalar_lea.vmem %s72_s22, 2048  ;;  %p628_p7 = scmp.lt.s32.totalorder %s72_s22, %s72_s22 }
  0x2f   :  { %p624_p6 = scmp.ne.s32.totalorder %s72_s22, %s623_s23  ;;  %p629_p8 = scmp.lt.s32.totalorder %s623_s23, %s623_s23 }
  0x31   :  { %p630_p9 = por %p629_p8, %p628_p7 }
  0x33   :  { %p631_p10 = pnand %p630_p9, %p624_p6 }
  0x35   :  { %634 = shalt.err (!%p631_p10)
}
  0x36   :  { %77 = dma.hbm_to_vmem [thread:$0]  %s762_s5, 2048, %s72_s22, [#allocation9], %s665_s29, %s665_s29, %s666_s30  }
  0x37   :  { %655 = dma.done.wait [#allocation3], 256  }
  0x38   :  { %656 = vsyncadd [#allocation3], 4294967040 }
  0x39   :  { %657 = dma.done.wait [#allocation6], 1280  }
  0x3a   :  { %658 = vsyncadd [#allocation6], 4294966016 }
  0x3b   :  { %659 = dma.done.wait [#allocation9], 3072  }
  0x3c   :  { %660 = vsyncadd [#allocation9], 4294964224  ;;  %v114_v0 = vld [vmem:[#allocation8 + $0x38] sm:$0xff]  ;;  %v113_v1 = vld [vmem:[#allocation8 + $0x30] sm:$0xff]  ;;  %vm115_vm0 = vcmask 523264   ;;  %s670_s27 = smov [#allocation11]  }
  0x3d   :  { %454 = vmatprep.subr.mxu1 %v114_v0  ;;  %v112_v2 = vld [vmem:[#allocation8 + $0x28] sm:$0xff]  ;;  %v105_v3 = vld [vmem:[#allocation5] sm:$0xff]  ;;  %v111_v4 = vld [vmem:[#allocation8 + $0x20] sm:$0xff]  ;;  %s396_s28 = sshll.u32 %s670_s27, 4  ;;  %s397_s28 = int_to_ptr.vmem [resolvable:$true] %s396_s28 }
  0x3e   :  { %455 = vmatpush3.msra.mxu1 %v114_v0  ;;  %470 = vmatprep.mubr.msk.f32.mxu1 %vm115_vm0, %v105_v3  ;;  %v110_v5 = vld [vmem:[#allocation8 + $0x18] sm:$0xff]  ;;  %v305_v7 = vld [vmem:[#allocation10 + $0x70] sm:$0xff]  ;;  %v108_v9 = vld [vmem:[#allocation8 + $0x8] sm:$0xff]  ;;  %p640_p12 = scmp.lt.s32.totalorder %s397_s28, %s397_s28 }
  0x3f   :  { %456 = vmatprep.subr.mxu1 %v113_v1  ;;  %v306_v6 = vld [vmem:[#allocation10 + $0x78] sm:$0xff]  ;;  %v109_v8 = vld [vmem:[#allocation8 + $0x10] sm:$0xff]  ;;  %v107_v10 = vld [vmem:[#allocation8] sm:$0xff] }
  0x40   :  { %457 = vmatpush3.msra.mxu1 %v113_v1  ;;  %492 = vmatprep.subr.mxu0 %v306_v6  ;;  %v106_v11 = vld [vmem:[#allocation5 + $0x8] sm:$0xff]  ;;  %v95_v13 = vld [vmem:[#allocation2] sm:$0xff]  ;;  %v103_v14 = vld [vmem:[#allocation7 + $0x30] sm:$0xff] }
  0x41   :  { %458 = vmatprep.subr.mxu1 %v112_v2  ;;  %493 = vmatpush3.msra.mxu0 %v306_v6  ;;  %v104_v12 = vld [vmem:[#allocation7 + $0x38] sm:$0xff]  ;;  %v102_v15 = vld [vmem:[#allocation7 + $0x28] sm:$0xff]  ;;  %v101_v16 = vld [vmem:[#allocation7 + $0x20] sm:$0xff] }
  0x42   :  { %459 = vmatpush3.msra.mxu1 %v112_v2  ;;  %494 = vmatprep.subr.mxu0 %v305_v7  ;;  %v100_v17 = vld [vmem:[#allocation7 + $0x18] sm:$0xff]  ;;  %v99_v18 = vld [vmem:[#allocation7 + $0x10] sm:$0xff]  ;;  %v98_v19 = vld [vmem:[#allocation7 + $0x8] sm:$0xff] }
  0x43   :  { %460 = vmatprep.subr.mxu1 %v111_v4  ;;  %495 = vmatpush3.msra.mxu0 %v305_v7  ;;  %v97_v20 = vld [vmem:[#allocation7] sm:$0xff]  ;;  %v96_v21 = vld [vmem:[#allocation2 + $0x8] sm:$0xff]  ;;  %v302_v24 = vld [vmem:[#allocation10 + $0x58] sm:$0xff] }
  0x44   :  { %461 = vmatpush3.msra.mxu1 %v111_v4  ;;  %v304_v22 = vld [vmem:[#allocation10 + $0x68] sm:$0xff]  ;;  %v303_v23 = vld [vmem:[#allocation10 + $0x60] sm:$0xff]  ;;  %v301_v25 = vld [vmem:[#allocation10 + $0x50] sm:$0xff] }
  0x45   :  { %462 = vmatprep.subr.mxu1 %v110_v5  ;;  %496 = vmatprep.subr.mxu0 %v304_v22  ;;  %v300_v26 = vld [vmem:[#allocation10 + $0x48] sm:$0xff]  ;;  %v299_v27 = vld [vmem:[#allocation10 + $0x40] sm:$0xff]  ;;  %v298_v28 = vld [vmem:[#allocation10 + $0x38] sm:$0xff] }
  0x46   :  { %463 = vmatpush3.msra.mxu1 %v110_v5  ;;  %497 = vmatpush3.msra.mxu0 %v304_v22  ;;  %v297_v29 = vld [vmem:[#allocation10 + $0x30] sm:$0xff]  ;;  %v296_v30 = vld [vmem:[#allocation10 + $0x28] sm:$0xff]  ;;  %v295_v31 = vld [vmem:[#allocation10 + $0x20] sm:$0xff] }
  0x47   :  { %464 = vmatprep.subr.mxu1 %v109_v8  ;;  %498 = vmatprep.subr.mxu0 %v303_v23  ;;  %v294_v32 = vld [vmem:[#allocation10 + $0x18] sm:$0xff]  ;;  %v293_v33 = vld [vmem:[#allocation10 + $0x10] sm:$0xff]  ;;  %v292_v34 = vld [vmem:[#allocation10 + $0x8] sm:$0xff] }
  0x48   :  { %465 = vmatpush3.msra.mxu1 %v109_v8  ;;  %499 = vmatpush3.msra.mxu0 %v303_v23  ;;  %v291_v35 = vld [vmem:[#allocation10] sm:$0xff] }
  0x49   :  { %466 = vmatprep.subr.mxu1 %v108_v9  ;;  %500 = vmatprep.subr.mxu0 %v302_v24  ;;  %v414_v39 = vld [vmem:[%s761_s4] ss:$0 sm:$0xff]  ;;  %s635_s4 = scalar_lea.vmem %s397_s28, 256 }
  0x4a   :  { %467 = vmatpush3.msra.mxu1 %v108_v9  ;;  %501 = vmatpush3.msra.mxu0 %v302_v24  ;;  %v415_v49 = vld [vmem:[%s763_s6] ss:$0 sm:$0xff]  ;;  %p636_p11 = scmp.ne.s32.totalorder %s397_s28, %s635_s4  ;;  %p641_p13 = scmp.lt.s32.totalorder %s635_s4, %s635_s4 }
  0x4b   :  { %468 = vmatprep.subr.mxu1 %v107_v10  ;;  %502 = vmatprep.subr.mxu0 %v301_v25 }
  0x4c   :  { %469 = vmatpush3.msra.mxu1 %v107_v10  ;;  %503 = vmatpush3.msra.mxu0 %v301_v25  ;;  %p642_p0 = por %p641_p13, %p640_p12 }
  0x4d   :  { %471 = vmatmul.mubr.msk.f32.vlgmr.msra.gmra.mxu1 %vm115_vm0, %v106_v11  ;;  %473 = vmatprep.subr.mxu1 %v104_v12 }
  0x4e   :  { %474 = vmatpush3.msra.mxu1 %v104_v12  ;;  %489 = vmatprep.mubr.msk.f32.mxu1 %vm115_vm0, %v95_v13  ;;  %p643_p1 = pnand %p642_p0, %p636_p11 }
  0x4f   :  { %475 = vmatprep.subr.mxu1 %v103_v14  ;;  %504 = vmatprep.subr.mxu0 %v300_v26 }
  0x50   :  { %476 = vmatpush3.msra.mxu1 %v103_v14  ;;  %505 = vmatpush3.msra.mxu0 %v300_v26 }
  0x51   :  { %477 = vmatprep.subr.mxu1 %v102_v15  ;;  %506 = vmatprep.subr.mxu0 %v299_v27 }
  0x52   :  { %478 = vmatpush3.msra.mxu1 %v102_v15  ;;  %507 = vmatpush3.msra.mxu0 %v299_v27 }
  0x53   :  { %479 = vmatprep.subr.mxu1 %v101_v16  ;;  %508 = vmatprep.subr.mxu0 %v298_v28 }
  0x54   :  { %480 = vmatpush3.msra.mxu1 %v101_v16  ;;  %509 = vmatpush3.msra.mxu0 %v298_v28 }
  0x55   :  { %481 = vmatprep.subr.mxu1 %v100_v17  ;;  %510 = vmatprep.subr.mxu0 %v297_v29 }
  0x56   :  { %482 = vmatpush3.msra.mxu1 %v100_v17  ;;  %511 = vmatpush3.msra.mxu0 %v297_v29 }
  0x57   :  { %483 = vmatprep.subr.mxu1 %v99_v18  ;;  %512 = vmatprep.subr.mxu0 %v296_v30 }
  0x58   :  { %484 = vmatpush3.msra.mxu1 %v99_v18  ;;  %513 = vmatpush3.msra.mxu0 %v296_v30 }
  0x59   :  { %485 = vmatprep.subr.mxu1 %v98_v19  ;;  %514 = vmatprep.subr.mxu0 %v295_v31 }
  0x5a   :  { %486 = vmatpush3.msra.mxu1 %v98_v19  ;;  %515 = vmatpush3.msra.mxu0 %v295_v31 }
  0x5b   :  { %487 = vmatprep.subr.mxu1 %v97_v20  ;;  %516 = vmatprep.subr.mxu0 %v294_v32 }
  0x5c   :  { %488 = vmatpush3.msra.mxu1 %v97_v20  ;;  %517 = vmatpush3.msra.mxu0 %v294_v32 }
  0x5d   :  { %490 = vmatmul.mubr.msk.f32.vlgmr.msra.gmra.mxu1 %vm115_vm0, %v96_v21  ;;  %518 = vmatprep.subr.mxu0 %v293_v33 }
  0x5e   :  { %519 = vmatpush3.msra.mxu0 %v293_v33 }
  0x5f   :  { %520 = vmatprep.subr.mxu0 %v292_v34 }
  0x60   :  { %521 = vmatpush3.msra.mxu0 %v292_v34 }
  0x61   :  { %522 = vmatprep.subr.mxu0 %v291_v35 }
  0x62   :  { %523 = vmatpush3.msra.mxu0 %v291_v35 }
 0x10d   :  { %v472_v36 = vpop.f32.mrf.mxu1 }
 0x10f   :  { %v188_v37 = vpop.f32.mrf.mxu1 }
 0x11d   :  { %v491_v38 = vpop.f32.mrf.mxu1 }
 0x11e   :  { %v275_v40 = vadd.f32 %v491_v38, %v472_v36 }
 0x11f   :  { %v269_v41 = vpop.f32.mrf.mxu1 }
 0x120   :  { %v286_v42 = vadd.f32 %v414_v39, %v275_v40  ;;  %v270_v43 = vadd.f32 %v269_v41, %v188_v37 }
 0x122   :  { %v285_v44 = vadd.f32 %v414_v39, %v270_v43  ;;  %v288_v45 = vmul.f32 0.01, %v286_v42 }
 0x124   :  { %v287_v46 = vmul.f32 0.01, %v285_v44  ;;  %v290_v48 = vmax.f32 %v286_v42, %v288_v45 }
 0x126   :  { %v289_v47 = vmax.f32 %v285_v44, %v287_v46 }
 0x128   :  { %524 = vmatprep.mubr.f32.mxu0 %v289_v47 }
 0x129   :  { %525 = vmatmul.mubr.f32.vlgmr.msra.gmra.mxu0 %v290_v48 }
 0x1e9   :  { %v526_v50 = vpop.f32.mrf.mxu0 }
 0x1ea   :  { %v386_v51 = vadd.f32 %v526_v50, %v415_v49 }
 0x1eb   :  { %v380_v52 = vpop.f32.mrf.mxu0 }
 0x1ec   :  { %390 = vst [vmem:[#allocation11 + $0x8] sm:$0xff] %v386_v51  ;;  %v381_v53 = vadd.f32 %v415_v49, %v380_v52 }
 0x1ee   :  { %389 = vst [vmem:[#allocation11] sm:$0xff] %v381_v53 }
 0x1ef   :  { %646 = shalt.err (!%p643_p1)
}
 0x1f0   :  { %402 = dma.vmem_to_hbm [thread:$0]  %s397_s28, 256, %s764_s7, [#allocation4], %s665_s29, %s665_s29, %s666_s30  }
 0x1f1   :  { %661 = dma.done.wait [#allocation4], 256  }
 0x1f2   :  { %662 = vsyncadd [#allocation4], 4294967040 }
 0x1f3   :  { %406 = vsyncpa [#allocation3], 1 }
 0x1f4   :  { %407 = vsyncpa [#allocation6], 1 }
 0x1f5   :  { %408 = vsyncpa [#allocation9], 1 }
 0x1f6   :  { %409 = vsyncpa [#allocation4], 1 }

</bundles_post_ra>
